<compile_context>
chip_gen: v6e
topology: v6e:2x2x1
jax: 0.10.0
libtpu: 0.0.40
codegen_flags: <defaults>
</compile_context>

<pallas_src>
import functools

import jax
import jax.numpy as jnp
from jax import lax
from jax.experimental import pallas as pl
from jax.experimental.pallas import tpu as pltpu


def _output_layer_kernel(u_w_ref, f_w_ref, f_b_ref, x_ref, t_ref,
                         y_ref, bce_ref, *, tb):
    u_w = u_w_ref[...]            # (TY, D)
    f_w = f_w_ref[...]            # (TY, D)
    f_b = f_b_ref[0]              # (TY,)

    rows = []
    for b in range(tb):           # tb is small & static -> unrolled
        xb = x_ref[b]             # (N, D)

        # att = U.weight @ xb^T without materializing the transpose:
        # contract over D (the last dim of both operands).
        att = lax.dot_general(u_w, xb, (((1,), (1,)), ((), ())),
                              preferred_element_type=jnp.float32)   # (TY, N)

        # numerically-stable softmax over the sequence axis
        att = att - jnp.max(att, axis=-1, keepdims=True)
        e = jnp.exp(att)
        s = jnp.sum(e, axis=-1, keepdims=True)                      # (TY, 1)
        alpha = e * pl.reciprocal(s, approx=False)                  # (TY, N)

        m = jnp.dot(alpha, xb, preferred_element_type=jnp.float32)  # (TY, D)

        # TODO(synk): nn.Dropout(args.dropout) is identity in eval mode.

        y_row = jnp.sum(f_w * m, axis=-1) + f_b                     # (TY,)
        rows.append(y_row.reshape(1, -1))

    y_blk = rows[0] if tb == 1 else jnp.concatenate(rows, axis=0)   # (TB, TY)
    y_ref[...] = y_blk                                              # lane-dense store

    # per-element BCE-with-logits terms (mean reduction applied in wrapper)
    t = t_ref[...]
    bce_ref[...] = (jnp.maximum(y_blk, 0.0) - y_blk * t
                    + jnp.log1p(jnp.exp(-jnp.abs(y_blk))))


def _pick_tile(dim, preferred, align):
    """Largest tile <= preferred that divides dim and satisfies the TPU
    (8, 128) block alignment, or the full dim as fallback."""
    if dim <= preferred:
        return dim
    t = (preferred // align) * align
    while t >= align:
        if dim % t == 0:
            return t
        t -= align
    return dim          # fall back: one full-dim tile


def output_layer_clause_forward(x, target, u_weight, final_weight, final_bias):
    """x: (B, N, D) f32, target: (B, Y) f32, u_weight/final_weight: (Y, D),
    final_bias: (Y,).  Returns (y: (B, Y), loss: scalar)."""
    B, N, D = x.shape
    Y = u_weight.shape[0]

    TB = _pick_tile(B, 8, 8)       # batch tile (sublane axis of y/target blocks)
    TY = _pick_tile(Y, 256, 128)   # label tile (lane axis; MXU-sized when Y large)
    # TODO(synk): N (softmax axis) is kept whole per step; very long sequences
    # would need an online-softmax loop over N-tiles.

    f_b2 = final_bias.reshape(1, Y)
    kernel = functools.partial(_output_layer_kernel, tb=TB)

    y, bce = pl.pallas_call(
        kernel,
        out_shape=(jax.ShapeDtypeStruct((B, Y), jnp.float32),
                   jax.ShapeDtypeStruct((B, Y), jnp.float32)),
        grid_spec=pltpu.PrefetchScalarGridSpec(
            num_scalar_prefetch=0,
            grid=(B // TB, Y // TY),
            in_specs=[
                pl.BlockSpec((TY, D), lambda i, j: (j, 0)),        # U.weight
                pl.BlockSpec((TY, D), lambda i, j: (j, 0)),        # final.weight
                pl.BlockSpec((1, TY), lambda i, j: (0, j)),        # final.bias
                pl.BlockSpec((TB, N, D), lambda i, j: (i, 0, 0)),  # x
                pl.BlockSpec((TB, TY), lambda i, j: (i, j)),       # target
            ],
            out_specs=[
                pl.BlockSpec((TB, TY), lambda i, j: (i, j)),       # y
                pl.BlockSpec((TB, TY), lambda i, j: (i, j)),       # per-elem BCE
            ],
        ),
        compiler_params=pltpu.CompilerParams(
            dimension_semantics=("parallel", "parallel"),
            vmem_limit_bytes=48 * 1024 * 1024),
    )(u_weight, final_weight, f_b2, x, target)

    loss = jnp.sum(bce) / (B * Y)
    return y, loss


def _reference_forward(x, target, u_weight, final_weight, final_bias):
    att = jnp.einsum("yd,bnd->byn", u_weight, x)
    alpha = jax.nn.softmax(att, axis=2)
    m = jnp.einsum("byn,bnd->byd", alpha, x)
    y = jnp.sum(final_weight[None] * m, axis=2) + final_bias[None]
    per = jnp.maximum(y, 0.0) - y * target + jnp.log1p(jnp.exp(-jnp.abs(y)))
    return y, jnp.mean(per)


if __name__ == "__main__":
    B, N, D, Y = 2, 8, 32, 16   # batch, seq-len, input_size, num-labels

    key = jax.random.PRNGKey(0)
    kx, kt, ku, kf, kb = jax.random.split(key, 5)

    x = jax.random.normal(kx, (B, N, D), dtype=jnp.float32)
    target = (jax.random.uniform(kt, (B, Y)) > 0.5).astype(jnp.float32)

    # xavier_uniform_ for both weight matrices (fan_in=D, fan_out=Y)
    xavier_bound = (6.0 / (D + Y)) ** 0.5
    u_weight = jax.random.uniform(ku, (Y, D), minval=-xavier_bound,
                                  maxval=xavier_bound, dtype=jnp.float32)
    final_weight = jax.random.uniform(kf, (Y, D), minval=-xavier_bound,
                                      maxval=xavier_bound, dtype=jnp.float32)
    # nn.Linear default bias init: U(-1/sqrt(fan_in), 1/sqrt(fan_in))
    b_bound = 1.0 / (D ** 0.5)
    final_bias = jax.random.uniform(kb, (Y,), minval=-b_bound,
                                    maxval=b_bound, dtype=jnp.float32)

    y, loss = output_layer_clause_forward(x, target, u_weight,
                                          final_weight, final_bias)
    jax.block_until_ready((y, loss))

    y_ref, loss_ref = _reference_forward(x, target, u_weight,
                                         final_weight, final_bias)
    assert jnp.allclose(y, y_ref, atol=1e-4, rtol=1e-4)
    assert jnp.allclose(loss, loss_ref, atol=1e-4, rtol=1e-4)

    print("KERNEL_OK")
</pallas_src>

<mosaic_0001>
module attributes {stable_mosaic.version = 11 : i64} {
  func.func @_output_layer_kernel(%arg0: i32, %arg1: i32, %arg2: memref<16x32xf32, #tpu.memory_space<vmem>>, %arg3: memref<16x32xf32, #tpu.memory_space<vmem>>, %arg4: memref<1x16xf32, #tpu.memory_space<vmem>>, %arg5: memref<2x8x32xf32, #tpu.memory_space<vmem>>, %arg6: memref<2x16xf32, #tpu.memory_space<vmem>>, %arg7: memref<2x16xf32, #tpu.memory_space<vmem>>, %arg8: memref<2x16xf32, #tpu.memory_space<vmem>>) attributes {dimension_semantics = [#tpu.dimension_semantics<parallel>, #tpu.dimension_semantics<parallel>], iteration_bounds = array<i64: 1, 1>, scalar_prefetch = 0 : i64, scratch_operands = 0 : i64, tpu.core_type = #tpu.core_type<tc>, window_params = [{transform_indices = @transform_0, window_bounds = array<i64: 16, 32>}, {transform_indices = @transform_1, window_bounds = array<i64: 16, 32>}, {transform_indices = @transform_2, window_bounds = array<i64: 1, 16>}, {transform_indices = @transform_3, window_bounds = array<i64: 2, 8, 32>}, {transform_indices = @transform_4, window_bounds = array<i64: 2, 16>}, {transform_indices = @transform_5, window_bounds = array<i64: 2, 16>}, {transform_indices = @transform_6, window_bounds = array<i64: 2, 16>}]} {
    %c0 = arith.constant 0 : index
    %c0_0 = arith.constant 0 : index
    %0 = vector.load %arg2[%c0, %c0_0] : memref<16x32xf32, #tpu.memory_space<vmem>>, vector<16x32xf32>
    %c0_1 = arith.constant 0 : index
    %c0_2 = arith.constant 0 : index
    %1 = vector.load %arg3[%c0_1, %c0_2] : memref<16x32xf32, #tpu.memory_space<vmem>>, vector<16x32xf32>
    %c0_3 = arith.constant 0 : index
    %c0_4 = arith.constant 0 : index
    %2 = vector.load %arg4[%c0_3, %c0_4] : memref<1x16xf32, #tpu.memory_space<vmem>>, vector<1x16xf32>
    %3 = vector.shape_cast %2 : vector<1x16xf32> to vector<16xf32>
    %c0_5 = arith.constant 0 : index
    %c0_6 = arith.constant 0 : index
    %c0_7 = arith.constant 0 : index
    %4 = vector.load %arg5[%c0_5, %c0_6, %c0_7] : memref<2x8x32xf32, #tpu.memory_space<vmem>>, vector<1x8x32xf32>
    %5 = vector.shape_cast %4 : vector<1x8x32xf32> to vector<8x32xf32>
    %cst = arith.constant dense<0.000000e+00> : vector<16x8xf32>
    %6 = tpu.matmul %0, %5, %cst {dimension_numbers = #tpu.dot_dimension_numbers<[1], [1], [0], [0], [0, 0, 1, 0], [], []>} : vector<16x32xf32>, vector<8x32xf32>, vector<16x8xf32> -> vector<16x8xf32>
    %cst_8 = arith.constant dense<0xFF800000> : vector<16xf32>
    %7 = vector.multi_reduction <maximumf>, %6, %cst_8 [1] : vector<16x8xf32> to vector<16xf32>
    %8 = vector.shape_cast %7 : vector<16xf32> to vector<16x1xf32>
    %9 = vector.broadcast %8 : vector<16x1xf32> to vector<16x8xf32>
    %10 = arith.subf %6, %9 : vector<16x8xf32>
    %11 = math.exp %10 : vector<16x8xf32>
    %cst_9 = arith.constant dense<0.000000e+00> : vector<16xf32>
    %12 = vector.multi_reduction <add>, %11, %cst_9 [1] : vector<16x8xf32> to vector<16xf32>
    %13 = vector.shape_cast %12 : vector<16xf32> to vector<16x1xf32>
    %14 = tpu.reciprocal %13 : vector<16x1xf32> -> vector<16x1xf32>
    %15 = vector.broadcast %14 : vector<16x1xf32> to vector<16x8xf32>
    %16 = arith.mulf %11, %15 : vector<16x8xf32>
    %cst_10 = arith.constant dense<0.000000e+00> : vector<16x32xf32>
    %17 = tpu.matmul %16, %5, %cst_10 {dimension_numbers = #tpu.dot_dimension_numbers<[1], [0], [0], [1], [0, 0, 1, 1], [], []>} : vector<16x8xf32>, vector<8x32xf32>, vector<16x32xf32> -> vector<16x32xf32>
    %18 = arith.mulf %1, %17 : vector<16x32xf32>
    %cst_11 = arith.constant dense<0.000000e+00> : vector<16xf32>
    %19 = vector.multi_reduction <add>, %18, %cst_11 [1] : vector<16x32xf32> to vector<16xf32>
    %20 = arith.addf %19, %3 : vector<16xf32>
    %21 = vector.shape_cast %20 : vector<16xf32> to vector<1x16xf32>
    %c1 = arith.constant 1 : index
    %c0_12 = arith.constant 0 : index
    %c0_13 = arith.constant 0 : index
    %22 = vector.load %arg5[%c1, %c0_12, %c0_13] : memref<2x8x32xf32, #tpu.memory_space<vmem>>, vector<1x8x32xf32>
    %23 = vector.shape_cast %22 : vector<1x8x32xf32> to vector<8x32xf32>
    %cst_14 = arith.constant dense<0.000000e+00> : vector<16x8xf32>
    %24 = tpu.matmul %0, %23, %cst_14 {dimension_numbers = #tpu.dot_dimension_numbers<[1], [1], [0], [0], [0, 0, 1, 0], [], []>} : vector<16x32xf32>, vector<8x32xf32>, vector<16x8xf32> -> vector<16x8xf32>
    %cst_15 = arith.constant dense<0xFF800000> : vector<16xf32>
    %25 = vector.multi_reduction <maximumf>, %24, %cst_15 [1] : vector<16x8xf32> to vector<16xf32>
    %26 = vector.shape_cast %25 : vector<16xf32> to vector<16x1xf32>
    %27 = vector.broadcast %26 : vector<16x1xf32> to vector<16x8xf32>
    %28 = arith.subf %24, %27 : vector<16x8xf32>
    %29 = math.exp %28 : vector<16x8xf32>
    %cst_16 = arith.constant dense<0.000000e+00> : vector<16xf32>
    %30 = vector.multi_reduction <add>, %29, %cst_16 [1] : vector<16x8xf32> to vector<16xf32>
    %31 = vector.shape_cast %30 : vector<16xf32> to vector<16x1xf32>
    %32 = tpu.reciprocal %31 : vector<16x1xf32> -> vector<16x1xf32>
    %33 = vector.broadcast %32 : vector<16x1xf32> to vector<16x8xf32>
    %34 = arith.mulf %29, %33 : vector<16x8xf32>
    %cst_17 = arith.constant dense<0.000000e+00> : vector<16x32xf32>
    %35 = tpu.matmul %34, %23, %cst_17 {dimension_numbers = #tpu.dot_dimension_numbers<[1], [0], [0], [1], [0, 0, 1, 1], [], []>} : vector<16x8xf32>, vector<8x32xf32>, vector<16x32xf32> -> vector<16x32xf32>
    %36 = arith.mulf %1, %35 : vector<16x32xf32>
    %cst_18 = arith.constant dense<0.000000e+00> : vector<16xf32>
    %37 = vector.multi_reduction <add>, %36, %cst_18 [1] : vector<16x32xf32> to vector<16xf32>
    %38 = arith.addf %37, %3 : vector<16xf32>
    %39 = vector.shape_cast %38 : vector<16xf32> to vector<1x16xf32>
    %40 = tpu.concatenate %21, %39 in 0 : vector<1x16xf32>, vector<1x16xf32> -> vector<2x16xf32>
    %c0_19 = arith.constant 0 : index
    %c0_20 = arith.constant 0 : index
    %41 = vector.load %arg7[%c0_19, %c0_20] : memref<2x16xf32, #tpu.memory_space<vmem>>, vector<2x16xf32>
    tpu.vector_store %arg7[%c0_19, %c0_20], %40 {strides = array<i32>} : memref<2x16xf32, #tpu.memory_space<vmem>>, vector<2x16xf32>,
    %c0_21 = arith.constant 0 : index
    %c0_22 = arith.constant 0 : index
    %42 = vector.load %arg6[%c0_21, %c0_22] : memref<2x16xf32, #tpu.memory_space<vmem>>, vector<2x16xf32>
    %cst_23 = arith.constant 0.000000e+00 : f32
    %43 = vector.broadcast %cst_23 : f32 to vector<2x16xf32>
    %44 = arith.maximumf %40, %43 : vector<2x16xf32>
    %45 = arith.mulf %40, %42 : vector<2x16xf32>
    %46 = arith.subf %44, %45 : vector<2x16xf32>
    %47 = math.absf %40 : vector<2x16xf32>
    %cst_24 = arith.constant 0.000000e+00 : f32
    %48 = vector.broadcast %cst_24 : f32 to vector<2x16xf32>
    %49 = arith.subf %48, %47 : vector<2x16xf32>
    %50 = math.exp %49 : vector<2x16xf32>
    %51 = math.log1p %50 : vector<2x16xf32>
    %52 = arith.addf %46, %51 : vector<2x16xf32>
    %c0_25 = arith.constant 0 : index
    %c0_26 = arith.constant 0 : index
    %53 = vector.load %arg8[%c0_25, %c0_26] : memref<2x16xf32, #tpu.memory_space<vmem>>, vector<2x16xf32>
    tpu.vector_store %arg8[%c0_25, %c0_26], %52 {strides = array<i32>} : memref<2x16xf32, #tpu.memory_space<vmem>>, vector<2x16xf32>,
    return
  }
  func.func @transform_0(%arg0: i32, %arg1: i32) -> (i32, i32) {
    %c0_i32 = arith.constant 0 : i32
    %c0_i32_0 = arith.constant 0 : i32
    return %arg1, %c0_i32 : i32, i32
  }
  func.func @transform_1(%arg0: i32, %arg1: i32) -> (i32, i32) {
    %c0_i32 = arith.constant 0 : i32
    %c0_i32_0 = arith.constant 0 : i32
    return %arg1, %c0_i32 : i32, i32
  }
  func.func @transform_2(%arg0: i32, %arg1: i32) -> (i32, i32) {
    %c0_i32 = arith.constant 0 : i32
    %c0_i32_0 = arith.constant 0 : i32
    return %c0_i32, %arg1 : i32, i32
  }
  func.func @transform_3(%arg0: i32, %arg1: i32) -> (i32, i32, i32) {
    %c0_i32 = arith.constant 0 : i32
    %c0_i32_0 = arith.constant 0 : i32
    %c0_i32_1 = arith.constant 0 : i32
    return %arg0, %c0_i32, %c0_i32_0 : i32, i32, i32
  }
  func.func @transform_4(%arg0: i32, %arg1: i32) -> (i32, i32) {
    %c0_i32 = arith.constant 0 : i32
    return %arg0, %arg1 : i32, i32
  }
  func.func @transform_5(%arg0: i32, %arg1: i32) -> (i32, i32) {
    %c0_i32 = arith.constant 0 : i32
    return %arg0, %arg1 : i32, i32
  }
  func.func @transform_6(%arg0: i32, %arg1: i32) -> (i32, i32) {
    %c0_i32 = arith.constant 0 : i32
    return %arg0, %arg1 : i32, i32
  }
}

</mosaic_0001>

<bundles_post_ra>
// kernel: tpu_custom_call.1
= control target key start
LH: loop header
LB: loop body
LE: loop exit
PB: predicated region body
PF: predicated region fallthrough
CT: control target
= control target key end

     0   :  { %12 = vsyncpa [#allocation3], 0  ;;  %s841_s0 = inlined_call_operand.hbm [shape: f32[16,32], index: 0, kind: input, shape index: {}]   ;;  %s842_s1 = inlined_call_operand.hbm [shape: f32[16,32], index: 1, kind: input, shape index: {}]   ;;  %s843_s2 = inlined_call_operand.vmem [shape: f32[1,16], index: 2, kind: input, shape index: {}]   ;;  %s844_s3 = inlined_call_operand.hbm [shape: f32[2,8,32], index: 3, kind: input, shape index: {}]   ;;  %s845_s4 = inlined_call_operand.vmem [shape: f32[2,16], index: 4, kind: input, shape index: {}]   ;;  %s846_s5 = inlined_call_operand.hbm [shape: f32[2,16], index: 5, kind: output, shape index: {0}]   ;;  %s847_s6 = inlined_call_operand.hbm [shape: f32[2,16], index: 6, kind: output, shape index: {1}]  }
   0x1   :  { %13 = vsyncpa [#allocation6], 0 }
   0x2   :  { %14 = vsyncpa [#allocation4], 0 }
   0x3   :  { %15 = vsyncpa [#allocation10], 0  ;;  %s751_s21 = smov [#allocation5]   ;;  %s752_s23 = smov [#allocation2]  }
   0x4   :  { %s33_s22 = sshll.u32 %s751_s21, 4  ;;  %s21_s24 = sshll.u32 %s752_s23, 4  ;;  %s34_s22 = int_to_ptr.vmem [resolvable:$true] %s33_s22  ;;  %s22_s24 = int_to_ptr.vmem [resolvable:$true] %s21_s24 }
   0x5   :  { %s651_s25 = scalar_lea.vmem %s34_s22, 256  ;;  %p656_p1 = scmp.lt.s32.totalorder %s34_s22, %s34_s22 }
   0x6   :  { %p652_p0 = scmp.ne.s32.totalorder %s34_s22, %s651_s25  ;;  %p657_p2 = scmp.lt.s32.totalorder %s651_s25, %s651_s25 }
   0x8   :  { %p658_p3 = por %p657_p2, %p656_p1 }
   0xa   :  { %p659_p4 = pnand %p658_p3, %p652_p0 }
   0xc   :  { %662 = shalt.err (!%p659_p4)
}
   0xd   :  { %s753_s26 = smov 128   ;;  %s754_s27 = smov 8  }
   0xe   :  { %39 = dma.hbm_to_vmem [thread:$0]  %s842_s1, 256, %s34_s22, [#allocation6], %s753_s26, %s753_s26, %s754_s27  }
   0xf   :  { %s671_s30 = scalar_lea.vmem %s22_s24, 256  ;;  %p676_p6 = scmp.lt.s32.totalorder %s22_s24, %s22_s24 }
  0x10   :  { %p672_p5 = scmp.ne.s32.totalorder %s22_s24, %s671_s30  ;;  %p677_p7 = scmp.lt.s32.totalorder %s671_s30, %s671_s30 }
  0x12   :  { %p678_p8 = por %p677_p7, %p676_p6 }
  0x14   :  { %p679_p9 = pnand %p678_p8, %p672_p5 }
  0x16   :  { %682 = shalt.err (!%p679_p9)
}
  0x17   :  { %27 = dma.hbm_to_vmem [thread:$0]  %s841_s0, 256, %s22_s24, [#allocation3], %s753_s26, %s753_s26, %s754_s27  }
  0x18   :  { %s755_s9 = smov [#allocation7]  }
  0x19   :  { %s47_s10 = sshll.u32 %s755_s9, 4  ;;  %s48_s10 = int_to_ptr.vmem [resolvable:$true] %s47_s10 }
  0x1a   :  { %s691_s11 = scalar_lea.vmem %s48_s10, 256  ;;  %p696_p11 = scmp.lt.s32.totalorder %s48_s10, %s48_s10 }
  0x1b   :  { %p692_p10 = scmp.ne.s32.totalorder %s48_s10, %s691_s11  ;;  %p697_p12 = scmp.lt.s32.totalorder %s691_s11, %s691_s11 }
  0x1d   :  { %p698_p13 = por %p697_p12, %p696_p11 }
  0x1f   :  { %p699_p0 = pnand %p698_p13, %p692_p10 }
  0x21   :  { %702 = shalt.err (!%p699_p0)
}
  0x22   :  { %53 = dma.hbm_to_vmem [thread:$0]  %s844_s3, 256, %s48_s10, [#allocation6], %s753_s26, %s753_s26, %s754_s27  }
  0x23   :  { %743 = dma.done.wait [#allocation3], 256  }
  0x24   :  { %744 = vsyncadd [#allocation3], 4294967040 }
  0x25   :  { %745 = dma.done.wait [#allocation6], 512  }
  0x26   :  { %746 = vsyncadd [#allocation6], 4294966784  ;;  %vm71_vm0 = vcmask 261120   ;;  %v70_v0 = vld [vmem:[#allocation7] sm:$0xff]  ;;  %v66_v2 = vld [vmem:[#allocation2 + $0x8] sm:$0xff]  ;;  %vm156_vm1 = vcmask 64512  }
  0x27   :  { %v65_v1 = vld [vmem:[#allocation2] sm:$0xff]  ;;  %593 = vmatprep.subr.msk.mxu0 %vm71_vm0, %v70_v0  ;;  %598 = vmatprep.subr.mxu1 %v70_v0  ;;  %v285_v17 = vld [vmem:[#allocation7 + $0x8] sm:$0xff]  ;;  %v68_v36 = vld [vmem:[#allocation5 + $0x8] sm:$0xff]  ;;  %v756_v59 = vmov 0   ;;  %vm496_vm2 = vcmask 130112   ;;  %vm517_vm3 = vcmask 1040384  }
  0x28   :  { %595 = vmatprep.mubr.msk.f32.mxu0 %vm71_vm0, %v65_v1  ;;  %594 = vmatpush3.xpose.msk.msra.mxu0 %vm71_vm0, %v70_v0  ;;  %v67_v38 = vld [vmem:[#allocation5] sm:$0xff]  ;;  %v575_v58 = vld [vmem:[%s843_s2] ss:$0 sm:$0xff]  ;;  %s757_s2 = smov [#allocation8]   ;;  %vm519_vm4 = vcmask 123904  }
  0x29   :  { %599 = vmatpush3.msra.mxu1 %v70_v0  ;;  %608 = vmatprep.subr.mxu0 %v285_v17  ;;  %s546_s13 = sshll.u32 %s757_s2, 4  ;;  %s547_s13 = int_to_ptr.vmem [resolvable:$true] %s546_s13 }
  0x2a   :  { %603 = vmatprep.subr.msk.mxu1 %vm71_vm0, %v285_v17  ;;  %622 = vset.pattern.permute.xlu0 %v756_v59  ;;  %s703_s14 = scalar_lea.vmem %s547_s13, 32  ;;  %p708_p2 = scmp.lt.s32.totalorder %s547_s13, %s547_s13 }
  0x2b   :  { %596 = vmatmul.mubr.msk.f32.vlgmr.msra.gmra.mxu0 %vm71_vm0, %v66_v2  ;;  %621 = vset.pattern.permute.xlu1 %v756_v59  ;;  %p704_p1 = scmp.ne.s32.totalorder %s547_s13, %s703_s14  ;;  %p709_p3 = scmp.lt.s32.totalorder %s703_s14, %s703_s14 }
  0x2c   :  { %609 = vmatpush3.msra.mxu0 %v285_v17 }
  0x2d   :  { %p710_p4 = por %p709_p3, %p708_p2 }
  0x2f   :  { %p711_p5 = pnand %p710_p4, %p704_p1 }
  0xeb   :  { %v597_v3 = vpop.f32.mrf.mxu0 }
  0xec   :  { %v160_v6 = vsel %vm156_vm1, %v597_v3, -inf }
  0xed   :  { %v147_v4 = vpop.f32.mrf.mxu0 }
  0xee   :  { %v157_v5 = vsel %vm156_vm1, %v147_v4, -inf }
  0xef   :  { %158 = vmax.xlane.f32.xlu0 %v157_v5 }
  0xf3   :  { %161 = vmax.xlane.f32.xlu0 %v160_v6  ;;  %v485_v6 = vlaneseq }
 0x178   :  { %v159_v7 = vpop.xlane.xlu0 %158 }
 0x179   :  { %v163_v8 = vsub.f32 %v147_v4, %v159_v7  ;;  %v486_v7 = vand.u32 127, %v485_v6 }
 0x17b   :  { %v165_v9 = vmul.f32 1.442695, %v163_v8  ;;  %v491_v8 = vadd.s32 4294967288, %v486_v7 }
 0x17c   :  { %v162_v10 = vpop.xlane.xlu0 %161 }
 0x17d   :  { %623 = vpow2.f32 %v165_v9  ;;  %v164_v11 = vsub.f32 %v597_v3, %v162_v10  ;;  %v488_v10 = vshrl.u32 %v485_v6, 7 }
 0x17f   :  { %v167_v12 = vmul.f32 1.442695, %v164_v11  ;;  %v494_v11 = vsub.s32 %v491_v8, %v488_v10 }
 0x181   :  { %625 = vpow2.f32 %v167_v12 }
 0x18a   :  { %v624_v13 = vpop.eup %623 }
 0x18b   :  { %v169_v14 = vsel %vm156_vm1, %v624_v13, 0.0 }
 0x18c   :  { %170 = vadd.xlane.f32.xlu1 %v169_v14 }
 0x18e   :  { %v626_v15 = vpop.eup %625 }
 0x18f   :  { %v172_v16 = vsel %vm156_vm1, %v626_v15, 0.0 }
 0x190   :  { %173 = vadd.xlane.f32.xlu1 %v172_v16 }
 0x215   :  { %v171_v18 = vpop.xlane.xlu1 %170 }
 0x216   :  { %627 = vrcp.f32 %v171_v18 }
 0x219   :  { %v174_v19 = vpop.xlane.xlu1 %173 }
 0x21a   :  { %629 = vrcp.f32 %v174_v19 }
 0x223   :  { %v628_v20 = vpop.eup %627 }
 0x224   :  { %v177_v21 = vmul.f32 %v628_v20, %v624_v13  ;;  %v489_v13 = vsub.s32 %v486_v7, %v488_v10 }
 0x226   :  { %600 = vmatprep.mubr.msk.f32.mxu1 %vm156_vm1, %v177_v21 }
 0x227   :  { %v630_v22 = vpop.eup %629 }
 0x228   :  { %v178_v23 = vmul.f32 %v630_v22, %v626_v15 }
 0x22a   :  { %601 = vmatmul.mubr.msk.f32.vlgmr.msra.gmra.mxu1 %vm156_vm1, %v178_v23 }
 0x22b   :  { %604 = vmatpush3.xpose.msk.msra.mxu1 %vm71_vm0, %v285_v17  ;;  %605 = vmatprep.mubr.msk.f32.mxu1 %vm71_vm0, %v65_v1 }
 0x22e   :  { %606 = vmatmul.mubr.msk.f32.vlgmr.msra.gmra.mxu1 %vm71_vm0, %v66_v2 }
 0x2ea   :  { %v602_v24 = vpop.f32.mrf.mxu1 }
 0x2eb   :  { %v261_v39 = vmul.f32 %v602_v24, %v68_v36 }
 0x2ec   :  { %v251_v25 = vpop.f32.mrf.mxu1 }
 0x2ed   :  { %v260_v42 = vmul.f32 %v251_v25, %v67_v38  ;;  %v265_v44 = vsel %vm71_vm0, %v261_v39, 0.0 }
 0x2ee   :  { %v607_v26 = vpop.f32.mrf.mxu1 }
 0x2ef   :  { %v367_v27 = vsel %vm156_vm1, %v607_v26, -inf  ;;  %v262_v45 = vsel %vm71_vm0, %v260_v42, 0.0 }
 0x2f0   :  { %368 = vmax.xlane.f32.xlu1 %v367_v27  ;;  %v355_v28 = vpop.f32.mrf.mxu1 }
 0x2f1   :  { %v364_v29 = vsel %vm156_vm1, %v355_v28, -inf }
 0x2f2   :  { %365 = vmax.xlane.f32.xlu0 %v364_v29 }
 0x379   :  { %v369_v30 = vpop.xlane.xlu1 %368 }
 0x37a   :  { %v371_v31 = vsub.f32 %v607_v26, %v369_v30 }
 0x37b   :  { %v366_v32 = vpop.xlane.xlu0 %365 }
 0x37c   :  { %v374_v33 = vmul.f32 1.442695, %v371_v31  ;;  %v370_v34 = vsub.f32 %v355_v28, %v366_v32 }
 0x37e   :  { %631 = vpow2.f32 %v374_v33  ;;  %v372_v35 = vmul.f32 1.442695, %v370_v34 }
 0x380   :  { %633 = vpow2.f32 %v372_v35 }
 0x38b   :  { %v632_v37 = vpop.eup %631 }
 0x38c   :  { %v379_v40 = vsel %vm156_vm1, %v632_v37, 0.0 }
 0x38d   :  { %v634_v41 = vpop.eup %633  ;;  %380 = vadd.xlane.f32.xlu1 %v379_v40 }
 0x38e   :  { %v376_v43 = vsel %vm156_vm1, %v634_v41, 0.0 }
 0x38f   :  { %377 = vadd.xlane.f32.xlu0 %v376_v43 }
 0x391   :  { %266 = vadd.xlane.f32.xlu1 %v265_v44 }
 0x393   :  { %263 = vadd.xlane.f32.xlu0 %v262_v45 }
 0x416   :  { %v381_v46 = vpop.xlane.xlu1 %380 }
 0x417   :  { %635 = vrcp.f32 %v381_v46 }
 0x418   :  { %v378_v47 = vpop.xlane.xlu0 %377 }
 0x419   :  { %637 = vrcp.f32 %v378_v47 }
 0x41a   :  { %v267_v60 = vpop.xlane.xlu1 %266 }
 0x41c   :  { %v264_v61 = vpop.xlane.xlu0 %263 }
 0x424   :  { %v636_v48 = vpop.eup %635 }
 0x425   :  { %v385_v51 = vmul.f32 %v636_v48, %v632_v37 }
 0x426   :  { %v638_v49 = vpop.eup %637 }
 0x427   :  { %v384_v50 = vmul.f32 %v638_v49, %v634_v41 }
 0x429   :  { %610 = vmatprep.mubr.msk.f32.mxu0 %vm156_vm1, %v384_v50 }
 0x42a   :  { %611 = vmatmul.mubr.msk.f32.vlgmr.msra.gmra.mxu0 %vm156_vm1, %v385_v51 }
 0x4ea   :  { %v612_v52 = vpop.f32.mrf.mxu0 }
 0x4eb   :  { %v468_v53 = vmul.f32 %v612_v52, %v68_v36 }
 0x4ec   :  { %v458_v54 = vpop.f32.mrf.mxu0 }
 0x4ed   :  { %v467_v55 = vmul.f32 %v458_v54, %v67_v38  ;;  %v472_v56 = vsel %vm71_vm0, %v468_v53, 0.0 }
 0x4ee   :  { %473 = vadd.xlane.f32.xlu1 %v472_v56 }
 0x4ef   :  { %v469_v57 = vsel %vm71_vm0, %v467_v55, 0.0 }
 0x4f0   :  { %470 = vadd.xlane.f32.xlu0 %v469_v57 }
 0x4ff   :  { %278 = vbcast.lane.b32.xlu1 %v575_v58, 264 }
 0x506   :  { %274 = vbcast.lane.b32.xlu0 %v575_v58, 256 }
 0x577   :  { %v474_v62 = vpop.xlane.xlu1 %473 }
 0x579   :  { %v471_v63 = vpop.xlane.xlu0 %470 }
 0x57b   :  { %v279_v3 = vpop.permute.xlu1 %278 }
 0x57c   :  { %v283_v4 = vadd.f32 %v279_v3, %v267_v60  ;;  %v476_v5 = vadd.f32 %v474_v62, %v279_v3 }
 0x57d   :  { %v275_v0 = vpop.permute.xlu0 %274 }
 0x57e   :  { %v282_v1 = vadd.f32 %v275_v0, %v264_v61  ;;  %v475_v2 = vadd.f32 %v471_v63, %v275_v0 }
 0x580   :  { %480 = vperm.xlu1 %621, %v282_v1   ;;  %502 = vperm.xlu0 %622, %v475_v2  }
 0x584   :  { %483 = vperm.xlu1 %621, %v283_v4  }
 0x588   :  { %505 = vperm.xlu1 %621, %v476_v5  }
 0x5fb   :  { %v481_v9 = vpop.permute.xlu1 %480  ;;  %v503_v14 = vpop.permute.xlu0 %502 }
 0x5fc   :  { %v490_v17 = vrot.slane %v481_v9, %v489_v13  ;;  %v510_v18 = vrot.slane %v503_v14, %v489_v13 }
 0x5ff   :  { %v484_v12 = vpop.permute.xlu1 %483 }
 0x600   :  { %v495_v15 = vrot.slane %v484_v12, %v494_v11 }
 0x602   :  { %v497_v20 = vsel %vm496_vm2, %v495_v15, %v490_v17 }
 0x603   :  { %v506_v16 = vpop.permute.xlu1 %505 }
 0x604   :  { %v514_v19 = vrot.slane %v506_v16, %v494_v11 }
 0x606   :  { %v515_v21 = vsel %vm496_vm2, %v514_v19, %v510_v18 }
 0x607   :  { %v518_v22 = vsel %vm517_vm3, %v497_v20, %v515_v21 }
 0x608   :  { %520 = vst.msk [vmem:[#allocation8] sm:$0x3] %vm519_vm4, %v518_v22  ;;  %v525_v23 = vand.u32 2147483647, %v518_v22 }
 0x609   :  { %714 = shalt.err (!%p711_p5)
}
 0x60a   :  { %549 = dma.vmem_to_hbm [thread:$0]  %s547_s13, 32, %s846_s5, [#allocation4]   ;;  %v526_v24 = vsub.f32 0.0, %v525_v23  ;;  %v521_v29 = vld [vmem:[%s845_s4] sm:$0x3]  ;;  %v522_v31 = vmax.f32 %v518_v22, 0.0 }
 0x60b   :  { %v523_v32 = vmul.f32 %v521_v29, %v518_v22  ;;  %s758_s19 = smov [#allocation9]  }
 0x60c   :  { %v527_v25 = vmul.f32 1.442695, %v526_v24  ;;  %s556_s5 = sshll.u32 %s758_s19, 4  ;;  %s557_s5 = int_to_ptr.vmem [resolvable:$true] %s556_s5 }
 0x60d   :  { %v524_v37 = vsub.f32 %v522_v31, %v523_v32  ;;  %s723_s20 = scalar_lea.vmem %s557_s5, 32  ;;  %p728_p7 = scmp.lt.s32.totalorder %s557_s5, %s557_s5 }
 0x60e   :  { %639 = vpow2.f32 %v527_v25  ;;  %p724_p6 = scmp.ne.s32.totalorder %s557_s5, %s723_s20  ;;  %p729_p8 = scmp.lt.s32.totalorder %s723_s20, %s723_s20 }
 0x610   :  { %p730_p9 = por %p729_p8, %p728_p7 }
 0x612   :  { %p731_p10 = pnand %p730_p9, %p724_p6 }
 0x61b   :  { %v640_v26 = vpop.eup %639 }
 0x61c   :  { %v529_v27 = vadd.f32 1.0, %v640_v26  ;;  %v532_v28 = vmul.f32 -0.5, %v640_v26  ;;  %v535_v33 = vand.u32 2147483647, %v640_v26 }
 0x61e   :  { %641 = vlog2.f32 %v529_v27  ;;  %v533_v30 = vadd.f32 1.0, %v532_v28  ;;  %vm536_vm5 = vcmp.lt.f32.partialorder %v535_v33, 0.0004427343 }
 0x620   :  { %v534_v36 = vmul.f32 %v640_v26, %v533_v30 }
 0x62b   :  { %v642_v34 = vpop.eup %641 }
 0x62c   :  { %v531_v35 = vmul.f32 0.6931472, %v642_v34 }
 0x62e   :  { %v537_v38 = vsel %vm536_vm5, %v534_v36, %v531_v35 }
 0x62f   :  { %v538_v39 = vadd.f32 %v537_v38, %v524_v37 }
 0x631   :  { %539 = vst.msk [vmem:[#allocation9] sm:$0x3] %vm519_vm4, %v538_v39 }
 0x632   :  { %734 = shalt.err (!%p731_p10)
}
 0x633   :  { %559 = dma.vmem_to_hbm [thread:$0]  %s557_s5, 32, %s847_s6, [#allocation10]  }
 0x634   :  { %747 = dma.done.wait [#allocation4], 32  }
 0x635   :  { %748 = vsyncadd [#allocation4], 4294967264 }
 0x636   :  { %749 = dma.done.wait [#allocation10], 32  }
 0x637   :  { %750 = vsyncadd [#allocation10], 4294967264 }
 0x638   :  { %566 = vsyncpa [#allocation3], 1 }
 0x639   :  { %567 = vsyncpa [#allocation6], 1 }
 0x63a   :  { %568 = vsyncpa [#allocation4], 1 }
 0x63b   :  { %569 = vsyncpa [#allocation10], 1 }

</bundles_post_ra>
